<compile_context>
chip_gen: v7x
topology: tpu7x:2x2x1
jax: 0.10.0
libtpu: 0.0.40
codegen_flags: <defaults>
</compile_context>

<pallas_src>
import jax
import jax.numpy as jnp
from jax.experimental import pallas as pl
from jax.experimental.pallas import tpu as pltpu

_MiB = 1024 * 1024


def _round_up(x, m):
    return (x + m - 1) // m * m


def _tpu_vmem_and_cores():
    """Trace-time hardware query; conservative fallbacks if unavailable."""
    vmem = 64 * _MiB
    cores = 1
    try:
        info = pltpu.get_tpu_info()
        vmem = int(getattr(info, "vmem_capacity_bytes", vmem))
        for name in ("num_cores", "num_tensorcores", "core_count"):
            c = getattr(info, name, None)
            if c:
                cores = int(c)
                break
    except Exception:
        pass
    return vmem, cores


def _linear_kernel(x_ref, w_ref, b_ref, o_ref):
    # x_ref: [TM, F], w_ref: [F, TN] (MXU-native [K, N] RHS), b_ref: [1, TN] f32.
    acc = jnp.dot(x_ref[...], w_ref[...], preferred_element_type=jnp.float32)
    o_ref[...] = (acc + b_ref[...]).astype(o_ref.dtype)


def _select_tiles(m, f, e_pad, x_bytes, w_bytes, o_bytes, budget, min_tiles):
    def fits(tn, w_buf, tm):
        w_foot = w_buf * (tn * f * w_bytes + tn * 4)       # weight + f32 bias blocks
        xo_foot = 2 * tm * (f * x_bytes + tn * o_bytes)    # double-buffered x / out
        return w_foot + xo_foot <= budget

    # --- E tile: prefer a single tile so the weight is DMA'd exactly once. ---
    if e_pad * f * w_bytes <= budget // 3 and fits(e_pad, 1, 8):
        tn, w_buf = e_pad, 1        # constant block index -> pl.Buffered(1)
    else:
        tn, w_buf = 128, 2
        for cand in (1024, 512, 256, 128):
            if e_pad % cand == 0 and fits(cand, 2, 8):
                tn, w_buf = cand, 2
                break
        # TODO(synk): if even tn=128 / tm=8 overflows (astronomically large F),
        # add an F-tiling grid axis with an f32 VMEM accumulator (pl.when pattern).

    # --- M tile: largest multiple of 8 fitting the remaining budget. ---
    tm = 8
    for cand in (2048, 1024, 512, 256, 128, 64, 32, 16, 8):
        if fits(tn, w_buf, cand):
            tm = cand
            break
    tm = min(tm, _round_up(m, 8))

    # --- Keep >= min_tiles grid tiles so every TensorCore gets work (v7x: 2 TCs). ---
    e_tiles = e_pad // tn
    while pl.cdiv(m, tm) * e_tiles < min_tiles and tm > 8:
        tm = max(8, _round_up(tm // 2, 8))
    return tm, tn, w_buf


def prepare_feature_projector_params(weight, bias):
    """One-time weight/bias preparation — do at init / weight load, NOT per call.

    weight: [E, F] (PyTorch nn.Linear layout), bias: [E].
    Returns (w_t [F, e_pad], bias2d [1, e_pad] f32, e).
    """
    e, _ = weight.shape
    e_pad = _round_up(e, 128)
    w_t = weight.T                           # [F, E]: MXU-native RHS, no in-kernel transpose
    b = bias.astype(jnp.float32)
    if e_pad != e:
        w_t = jnp.pad(w_t, ((0, 0), (0, e_pad - e)))
        b = jnp.pad(b, (0, e_pad - e))
    return w_t, b.reshape(1, e_pad), e


def feature_projector_apply(x, w_t, bias2d, e):
    """y = x @ W^T + b over the last axis of x (nn.Linear forward)."""
    f = x.shape[-1]
    e_pad = w_t.shape[1]
    lead_shape = x.shape[:-1]

    x2d = x.reshape(-1, f)                   # [M, F]
    m = x2d.shape[0]
    out_dtype = x.dtype

    x_bytes = jnp.dtype(x.dtype).itemsize
    w_bytes = jnp.dtype(w_t.dtype).itemsize
    o_bytes = jnp.dtype(out_dtype).itemsize

    vmem, cores = _tpu_vmem_and_cores()
    budget = max(12 * _MiB, min(vmem * 3 // 8, 48 * _MiB))   # ~48 MiB v5e/v6e, ~24 MiB v7x
    vmem_limit = int(min(vmem // 2, 64 * _MiB))
    min_tiles = max(2, 2 * cores)

    tm, tn, w_buf = _select_tiles(m, f, e_pad, x_bytes, w_bytes, o_bytes,
                                  budget, min_tiles)
    e_tiles = e_pad // tn
    grid = (pl.cdiv(m, tm), e_tiles)         # ragged final M block masked by Pallas

    w_mode = pl.Buffered(1) if w_buf == 1 else None

    out = pl.pallas_call(
        _linear_kernel,
        out_shape=jax.ShapeDtypeStruct((m, e_pad), out_dtype),
        grid_spec=pltpu.PrefetchScalarGridSpec(
            num_scalar_prefetch=0,
            grid=grid,
            in_specs=[
                pl.BlockSpec((tm, f), lambda i, j: (i, 0)),                        # x tile
                pl.BlockSpec((f, tn), lambda i, j: (0, j), pipeline_mode=w_mode),  # weight tile
                pl.BlockSpec((1, tn), lambda i, j: (0, j), pipeline_mode=w_mode),  # bias tile
            ],
            out_specs=pl.BlockSpec((tm, tn), lambda i, j: (i, j)),
        ),
        compiler_params=pltpu.CompilerParams(
            dimension_semantics=("parallel", "parallel"),
            vmem_limit_bytes=vmem_limit),
    )(x2d, w_t, bias2d)

    if e_pad != e:
        out = out[:, :e]                     # drop lane padding (kept lane-dense stores)
    return out.reshape(*lead_shape, e)


if __name__ == "__main__":
    # Small shapes consistent with the module: batch=2, seq=8, feature=32, embed=64.
    batch, seq, feature_dims, embedding_dims = 2, 8, 32, 64

    key = jax.random.PRNGKey(0)
    kx, kw, kb = jax.random.split(key, 3)

    x = jax.random.normal(kx, (batch, seq, feature_dims), dtype=jnp.float32)

    # Deterministic init matching PyTorch nn.Linear: U(-1/sqrt(in), 1/sqrt(in))
    bound = 1.0 / (feature_dims ** 0.5)
    weight = jax.random.uniform(
        kw, (embedding_dims, feature_dims), minval=-bound, maxval=bound,
        dtype=jnp.float32)
    bias = jax.random.uniform(
        kb, (embedding_dims,), minval=-bound, maxval=bound, dtype=jnp.float32)

    # One-time parameter prep (pre-transposed, lane-padded weight; f32 bias).
    w_t, b2d, e = prepare_feature_projector_params(weight, bias)

    proj = jax.jit(feature_projector_apply, static_argnums=(3,))
    y = jax.block_until_ready(proj(x, w_t, b2d, e))

    # Correctness check against plain-JAX reference.
    y_ref = x @ weight.T + bias
    assert y.shape == (batch, seq, embedding_dims)
    assert jnp.allclose(y, y_ref, atol=1e-5, rtol=1e-5)

    print("KERNEL_OK")
</pallas_src>

<mosaic_0001>
module attributes {stable_mosaic.version = 11 : i64} {
  func.func @_linear_kernel(%arg0: i32, %arg1: i32, %arg2: memref<8x32xf32, #tpu.memory_space<vmem>>, %arg3: memref<32x128xf32, #tpu.memory_space<vmem>>, %arg4: memref<1x128xf32, #tpu.memory_space<vmem>>, %arg5: memref<8x128xf32, #tpu.memory_space<vmem>>) attributes {dimension_semantics = [#tpu.dimension_semantics<parallel>, #tpu.dimension_semantics<parallel>], iteration_bounds = array<i64: 2, 1>, scalar_prefetch = 0 : i64, scratch_operands = 0 : i64, tpu.core_type = #tpu.core_type<tc>, window_params = [{transform_indices = @transform_0, window_bounds = array<i64: 8, 32>}, {pipeline_mode = #tpu.pipeline_mode<synchronous>, transform_indices = @transform_1, window_bounds = array<i64: 32, 128>}, {pipeline_mode = #tpu.pipeline_mode<synchronous>, transform_indices = @transform_2, window_bounds = array<i64: 1, 128>}, {transform_indices = @transform_3, window_bounds = array<i64: 8, 128>}]} {
    %c0 = arith.constant 0 : index
    %c0_0 = arith.constant 0 : index
    %0 = vector.load %arg2[%c0, %c0_0] : memref<8x32xf32, #tpu.memory_space<vmem>>, vector<8x32xf32>
    %c0_1 = arith.constant 0 : index
    %c0_2 = arith.constant 0 : index
    %1 = vector.load %arg3[%c0_1, %c0_2] : memref<32x128xf32, #tpu.memory_space<vmem>>, vector<32x128xf32>
    %cst = arith.constant dense<0.000000e+00> : vector<8x128xf32>
    %2 = tpu.matmul %0, %1, %cst {dimension_numbers = #tpu.dot_dimension_numbers<[1], [0], [0], [1], [0, 0, 1, 1], [], []>} : vector<8x32xf32>, vector<32x128xf32>, vector<8x128xf32> -> vector<8x128xf32>
    %c0_3 = arith.constant 0 : index
    %c0_4 = arith.constant 0 : index
    %3 = vector.load %arg4[%c0_3, %c0_4] : memref<1x128xf32, #tpu.memory_space<vmem>>, vector<1x128xf32>
    %4 = vector.broadcast %3 : vector<1x128xf32> to vector<8x128xf32>
    %5 = arith.addf %2, %4 : vector<8x128xf32>
    %c0_5 = arith.constant 0 : index
    %c0_6 = arith.constant 0 : index
    %6 = vector.load %arg5[%c0_5, %c0_6] : memref<8x128xf32, #tpu.memory_space<vmem>>, vector<8x128xf32>
    tpu.vector_store %arg5[%c0_5, %c0_6], %5 {strides = array<i32>} : memref<8x128xf32, #tpu.memory_space<vmem>>, vector<8x128xf32>,
    return
  }
  func.func @transform_0(%arg0: i32, %arg1: i32) -> (i32, i32) {
    %c0_i32 = arith.constant 0 : i32
    %c0_i32_0 = arith.constant 0 : i32
    return %arg0, %c0_i32 : i32, i32
  }
  func.func @transform_1(%arg0: i32, %arg1: i32) -> (i32, i32) {
    %c0_i32 = arith.constant 0 : i32
    %c0_i32_0 = arith.constant 0 : i32
    return %c0_i32, %arg1 : i32, i32
  }
  func.func @transform_2(%arg0: i32, %arg1: i32) -> (i32, i32) {
    %c0_i32 = arith.constant 0 : i32
    %c0_i32_0 = arith.constant 0 : i32
    return %c0_i32, %arg1 : i32, i32
  }
  func.func @transform_3(%arg0: i32, %arg1: i32) -> (i32, i32) {
    %c0_i32 = arith.constant 0 : i32
    return %arg0, %arg1 : i32, i32
  }
}

</mosaic_0001>

<bundles_post_ra>
// kernel: feature_projector_apply.1
= control target key start
LH: loop header
LB: loop body
LE: loop exit
PB: predicated region body
PF: predicated region fallthrough
CT: control target
= control target key end

     0   :  { %8 = vsyncpa [#allocation3], 0  ;;  %s844_s0 = inlined_call_operand.hbm [shape: f32[16,32], index: 0, kind: input, shape index: {}]   ;;  %s845_s1 = inlined_call_operand.hbm [shape: f32[32,128], index: 1, kind: input, shape index: {}]   ;;  %s846_s2 = inlined_call_operand.vmem [shape: f32[1,128], index: 2, kind: input, shape index: {}]   ;;  %s847_s3 = inlined_call_operand.vmem [shape: f32[16,128], index: 3, kind: output, shape index: {}]  }
   0x1   :  { %10 = vsyncpa [#allocation3 + $0x1], 0 }
   0x2   :  { %11 = vsyncpa [#allocation5], 0  ;;  %s686_s12 = smov 0   ;;  %s688_s13 = smov 0  }
   0x3   :  { %s690_s14 = smov 0   ;;  %s692_s15 = smov 0  }
   0x4   :  { %s694_s16 = smov 0   ;;  %s696_s17 = smov 0  }
   0x5 LB: > { %s436_s18 = sadd.s32 4294967295, %s657_s17   ;;  %p49_p0 = scmp.ne.s32.totalorder %s641_s13, %s637_s12  ;;  %s657_s17 = sphi %s696_s17, %s17_s17   ;;  %s653_s16 = sphi %s694_s16, %s864_s16   ;;  %s649_s15 = sphi %s692_s15, %s863_s15   ;;  %s645_s14 = sphi %s690_s14, %s862_s14   ;;  %s641_s13 = sphi %s688_s13, %s861_s13   ;;  %s637_s12 = sphi %s686_s12, %s860_s12  }
   0x6   : > { %p716_p1 = scmp.eq.s32.totalorder %s436_s18, 0  ;;  %p438_p2 = scmp.ge.s32.totalorder %s657_s17, 1 }
   0x7   : > { %p140_p3 = scmp.lt.s32.totalorder %s657_s17, 3  ;;  %s659_s22 = smov [#allocation4]  }
   0x8   : > { %s852_s19 = scalar_select %p716_p1, 1, 0 }
   0x9   : > { %p724_p4 = por %p716_p1, %p49_p0  ;;  %p728_p5 = pnand %p438_p2, %p140_p3 }
   0xa   : > { %s154_s23 = sshll.u32 %s659_s22, 4  ;;  %s29_s25 = sadd.s32 1, %s653_s16  ;;  %s155_s23 = int_to_ptr.vmem [resolvable:$true] %s154_s23 }
   0xb   : > { %s853_s20 = scalar_select %p724_p4, 1, 0 }
   0xc   : > { %s854_s21 = scalar_select %p728_p5, 1, 0 }
   0xd   : > { %p480_p6 = pneg %p728_p5  ;;  %s545_s28 = scalar_lea.hbm %s845_s1, 512 }
   0xe   : > { %p546_p8 = scmp.ne.s32.totalorder %s845_s1, %s545_s28  ;;  %p552_p12 = scmp.lt.u32.totalorder %s545_s28, %s845_s1 }
   0xf   : > { %p736_p7 = pnand %p480_p6, %p716_p1 }
  0x11   : > { %p547_p9 = pneg %p736_p7 }
  0x13   : > { %p548_p10 = pnand %p547_p9, %p546_p8 }
  0x15   : > { %p549_p11 = pneg %p548_p10 }
  0x17   : > { %p554_p13 = pnand %p552_p12, %p549_p11 }
  0x19   : > { %557 = shalt.err (!%p554_p13)
}
  0x1a   : > { %s558_s6 = scalar_lea.vmem %s155_s23, 512  ;;  %p566_p6 = scmp.lt.s32.totalorder %s155_s23, %s155_s23 }
  0x1b   : > { %p559_p0 = scmp.ne.s32.totalorder %s155_s23, %s558_s6  ;;  %p567_p1 = scmp.lt.s32.totalorder %s558_s6, %s558_s6 }
  0x1d   : > { %p561_p2 = pnand %p559_p0, %p547_p9  ;;  %p568_p4 = por %p567_p1, %p566_p6 }
  0x1f   : > { %p562_p3 = pneg %p561_p2 }
  0x21   : > { %p569_p5 = pnand %p568_p4, %p562_p3 }
  0x23   : > { %572 = shalt.err (!%p569_p5)
}
  0x24   : > { %s660_s7 = smov 128   ;;  %s661_s8 = smov 8  }
  0x25   : > { %483 = dma.hbm_to_vmem [thread:$0]  (!%p736_p7), %s845_s1, 512, %s155_s23, [#allocation5], %s660_s7, %s660_s7, %s661_s8  }
  0x26   : > { %p31_p1 = scmp.ge.s32.totalorder %s29_s25, 2  ;;  %s36_s11 = sadd.s32 1, %s645_s14 }
  0x27   : > { %p43_p4 = scmp.ne.s32.totalorder %s645_s14, %s641_s13  ;;  %p44_p5 = scmp.eq.s32.totalorder %s657_s17, 0 }
  0x28   : > { %s866_s25 = smov (%p31_p1, %s29_s25), 0  ;;  %p489_p9 = scmp.lt.s32.totalorder %s657_s17, 2 }
  0x29   : > { %p45_p8 = por %p44_p5, %p43_p4  ;;  %s33_s12 = ssub.s32 %s653_s16, %s866_s25 }
  0x2a   : > { %s174_s18 = sand.u32 1, %s645_s14   ;;  %p34_p10 = scmp.eq.s32.totalorder %s33_s12, 0 }
  0x2b   : > { %s442_s22 = sshll.u32 %s174_s18, 3  ;;  %s443_s26 = sshll.u32 %s653_s16, 7 }
  0x2c   : > { %s769_s27 = scalar_select %p34_p10, %s645_s14, %s36_s11  }
  0x2d   : > { %s774_s23 = scalar_lea.hbm %s844_s0, %s443_s26  ;;  %s178_s29 = scalar_lea.vmem [#allocation2], %s442_s22 }
  0x2e   : > { %s185_s30 = sshll.u32 %s178_s29, 4  ;;  %p776_p7 = pnand %p489_p9, %p45_p8  ;;  %s780_s30 = int_to_ptr.vmem [resolvable:$true] %s185_s30 }
  0x2f   : > { %s175_s5 = scalar_lea.sflag [#allocation3], %s174_s18  ;;  %s573_s6 = scalar_lea.hbm %s774_s23, 128 }
  0x30   : > { %p574_p11 = scmp.ne.s32.totalorder %s774_s23, %s573_s6  ;;  %p575_p12 = pneg %p776_p7 }
  0x31   : > { %s578_s9 = scalar_lea.hbm %s844_s0, 256  ;;  %p579_p2 = scmp.lt.u32.totalorder %s774_s23, %s844_s0 }
  0x32   : > { %p576_p13 = pnand %p575_p12, %p574_p11  ;;  %p580_p3 = scmp.lt.u32.totalorder %s578_s9, %s573_s6 }
  0x33   : > { %p582_p1 = scmp.lt.u32.totalorder %s573_s6, %s774_s23 }
  0x34   : > { %p577_p0 = pneg %p576_p13  ;;  %p581_p6 = por %p580_p3, %p579_p2 }
  0x36   : > { %p583_p4 = por %p582_p1, %p581_p6 }
  0x38   : > { %p584_p5 = pnand %p583_p4, %p577_p0 }
  0x3a   : > { %587 = shalt.err (!%p584_p5)
}
  0x3b   : > { %s588_s12 = scalar_lea.vmem %s780_s30, 128  ;;  %s662_s18 = smov [#allocation2]  }
  0x3c   : > { %p589_p8 = scmp.ne.s32.totalorder %s780_s30, %s588_s12  ;;  %s593_s22 = sshll.u32 %s662_s18, 4  ;;  %s594_s22 = int_to_ptr.vmem [resolvable:$false] %s593_s22 }
  0x3d   : > { %s595_s26 = scalar_lea.vmem %s594_s22, 256  ;;  %p596_p11 = scmp.lt.s32.totalorder %s780_s30, %s594_s22 }
  0x3e   : > { %p591_p9 = pnand %p589_p8, %p575_p12  ;;  %p597_p13 = scmp.lt.s32.totalorder %s595_s26, %s588_s12 }
  0x40   : > { %p592_p10 = pneg %p591_p9  ;;  %p598_p2 = por %p597_p13, %p596_p11 }
  0x42   : > { %p599_p3 = pnand %p598_p2, %p592_p10 }
  0x44   : > { %602 = shalt.err (!%p599_p3)
}
  0x45   : > { %487 = dma.hbm_to_vmem [thread:$0]  (!%p776_p7), %s774_s23, 128, %s780_s30, %s175_s5  }
  0x46   : > { %p857_p0 = scmp.ne.s32.totalorder %s854_s21, 0 }
  0x47   : > { %s196_s24 = sand.u32 (!%p857_p0), 1, %s641_s13   ;;  %p858_p12 = scmp.ne.s32.totalorder (!%p857_p0), %s853_s20, 0 }
  0x48   : > { %194 = sbr.rel (%p857_p0) target bundleno = 309 (0x135), region = 32  ;;  %s445_s28 = sshll.u32 (!%p857_p0), %s196_s24, 3 }
  0x49   : > { %s197_s29 = scalar_lea.sflag (!%p857_p0), [#allocation3], %s196_s24  ;;  %s200_s6 = scalar_lea.vmem (!%p857_p0), [#allocation2], %s445_s28 }
  0x4f   : > { %628 = dma.done.wait (%p858_p12), %s197_s29, 128  }
  0x50   : > { %630 = vsyncadd (%p858_p12), %s197_s29, 4294967168  ;;  %p859_p6 = scmp.ne.s32.totalorder %s852_s19, 0 }
  0x52   : > { %632 = dma.done.wait (%p859_p6), [#allocation5], 512  }
  0x53   : > { %634 = vsyncadd (%p859_p6), [#allocation5], 4294966784  ;;  %v663_v0 = vmov 0.0|0.0   ;;  %vm664_vm0 = vmmov 0   ;;  %v665_v1 = vmov 0.0   ;;  %v243_v2 = vld [vmem:[#allocation4] sm:$0xff] }
  0x54   : > { %468 = vmatprep.subr.bf16.mxu0 %v663_v0  ;;  %465 = vmatprep.mubr.msk.f32.mxu0 %vm664_vm0, %v665_v1  ;;  %v244_v3 = vld [vmem:[#allocation4 + $0x8] sm:$0xff]  ;;  %v245_v4 = vld [vmem:[#allocation4 + $0x10] sm:$0xff]  ;;  %v246_v6 = vld [vmem:[#allocation4 + $0x18] sm:$0xff]  ;;  %vm254_vm1 = vcmask 261120   ;;  %p235_p7 = scmp.lt.s32.totalorder %s649_s15, 1 }
  0x55   : > { %v469_v5 = vpack.c.bf16 %v244_v3, %v243_v2  ;;  %v472_v7 = vpack.c.bf16 %v246_v6, %v245_v4  ;;  %v242_v8 = vld [vmem:[%s200_s6] sm:$0xff] }
  0x56   : > { %s868_s15 = smov (!%p235_p7, %s649_s15), 1  ;;  %v448_v9 = vld [vmem:[%s846_s2] ss:$0 sm:$0xff] }
  0x57   : > { %470 = vmatpush3.bf16.msra.mxu0 %v469_v5  ;;  %s447_s19 = sshll.u32 %s868_s15, 3 }
  0x58   : > { %471 = vmatprep.subr.bf16.mxu0 %v663_v0  ;;  %s241_s4 = scalar_lea.vmem %s847_s3, %s447_s19 }
  0x5b   : > { %473 = vmatpush3.bf16.msra.mxu0 %v472_v7 }
  0x5e   : > { %466 = vmatmul.mubr.msk.f32.vlgmr.msra.gmra.mrb[0].mxu0 %vm254_vm1, %v242_v8 }
 0x131   : > { %v324_v10 = vpop.f32.mrb[0].mxu0 }
 0x132   : > { %v325_v11 = vadd.f32 %v448_v9, %v324_v10  ;;  %v467_v12 = vpop.f32.mrb[1].mxu0 }
 0x134   : > { %328 = vst [vmem:[%s241_s4] sm:$0xff] %v325_v11 }
 0x135 PF: > { %s17_s17 = sadd.s32 1, %s657_s17   ;;  %s860_s12 = smov %s641_s13 }
 0x136   : > { %p14_p1 = scmp.ge.s32.totalorder %s17_s17, 4   ;;  %s861_s13 = smov %s645_s14 }
 0x137   : > { %s862_s14 = smov %s769_s27  ;;  %s863_s15 = smov %s653_s16 }
 0x138   : > { %s864_s16 = smov %s866_s25  ;;  %16 = sbr.rel (!%p14_p1) target bundleno = 5 (0x5), region = 80 }
 0x13f   :  { %354 = vsyncpa [#allocation3], 1 }
 0x140   :  { %356 = vsyncpa [#allocation3 + $0x1], 1 }
 0x141   :  { %357 = vsyncpa [#allocation5], 1 }

</bundles_post_ra>
